<compile_context>
chip_gen: v7x
topology: tpu7x:2x2x1
jax: 0.10.0
libtpu: 0.0.40
codegen_flags: <defaults>
</compile_context>

<pallas_src>
import functools

import jax
import jax.numpy as jnp
from jax.experimental import pallas as pl
from jax.experimental.pallas import tpu as pltpu


# --------------------------------------------------------------------------
# Fused single-pass kernel: one batch tile (TB, C, HW) per grid step.
# --------------------------------------------------------------------------
def _se_fused_kernel(x_ref, w1t_ref, w2t_ref, o_ref, *, inv_hw):
    x = x_ref[...]                                    # (TB, C, HW), input dtype
    tb, c, hw = x.shape

    # Squeeze: global average pool over the spatial (lane) axis, f32 accumulate.
    if x.dtype == jnp.float32:
        pooled = jnp.sum(x, axis=-1)                  # (TB, C) f32, no cast temp
    else:
        # MXU ones-matmul: avoids materializing a full-block f32 cast of x.
        ones_col = jnp.ones((hw, 1), x.dtype)
        pooled = jnp.dot(x.reshape(tb * c, hw), ones_col,
                         preferred_element_type=jnp.float32).reshape(tb, c)
    pooled = pooled * inv_hw                          # (TB, C) f32

    # Excitation gates: FC -> ReLU -> FC -> Sigmoid (tiny, f32).
    h = jnp.maximum(jnp.dot(pooled, w1t_ref[...],
                            preferred_element_type=jnp.float32), 0.0)
    s = jax.nn.sigmoid(jnp.dot(h, w2t_ref[...],
                               preferred_element_type=jnp.float32))   # (TB, C)

    # Scale: multiply in the input dtype (gate stays f32 on the f32 path).
    gate = s.astype(x.dtype)
    o_ref[...] = (x * gate[:, :, None]).astype(o_ref.dtype)


# --------------------------------------------------------------------------
# Two-pass fallback (B == 1 or oversized image slab).
# Pass 1: accumulate the pooled sum over HW chunks, emit gates (B, C, 1) f32.
# Pass 2: scale every HW chunk by the per-channel gate.
# --------------------------------------------------------------------------
def _se_pool_gate_kernel(x_ref, w1t_ref, w2t_ref, g_ref, *, hw, inv_hw):
    hj = pl.program_id(1)

    @pl.when(hj == 0)
    def _():
        g_ref[...] = jnp.zeros_like(g_ref)

    x = x_ref[...]                                    # (TBb, C, HC)
    tb, c, hc = x.shape
    # Mask the ragged tail of the global spatial axis: boundary blocks hold
    # unspecified values, which must not leak into the pooled sum.
    col = jax.lax.broadcasted_iota(jnp.int32, (tb, c, hc), 2) + hj * hc
    x = jnp.where(col < hw, x, jnp.zeros_like(x))

    if x.dtype == jnp.float32:
        part = jnp.sum(x, axis=-1)[:, :, None]        # (TBb, C, 1) f32
    else:
        ones_col = jnp.ones((hc, 1), x.dtype)
        part = jnp.dot(x.reshape(tb * c, hc), ones_col,
                       preferred_element_type=jnp.float32).reshape(tb, c, 1)
    g_ref[...] += part

    @pl.when(hj == pl.num_programs(1) - 1)
    def _():
        pooled = g_ref[...].reshape(tb, c) * inv_hw   # (TBb, C) f32
        h = jnp.maximum(jnp.dot(pooled, w1t_ref[...],
                                preferred_element_type=jnp.float32), 0.0)
        s = jax.nn.sigmoid(jnp.dot(h, w2t_ref[...],
                                   preferred_element_type=jnp.float32))
        g_ref[...] = s[:, :, None]                    # (TBb, C, 1) f32 gates


def _se_scale_kernel(x_ref, g_ref, o_ref):
    x = x_ref[...]                                    # (TBb, C, HC)
    g = g_ref[...].astype(x.dtype)                    # (TBb, C, 1) lane splat
    o_ref[...] = (x * g).astype(o_ref.dtype)


# --------------------------------------------------------------------------
# Wrapper
# --------------------------------------------------------------------------
def se_layer(x_nchw, w1, w2, *, target_block_bytes=4 * 1024 * 1024):
    """SELayer forward.  x_nchw: (B, C, H, W); w1: (hidden, C); w2: (C, hidden)."""
    B, C, H, W = x_nchw.shape
    HW = H * W
    dtype = x_nchw.dtype
    itemsize = jnp.dtype(dtype).itemsize

    x3 = x_nchw.reshape(B, C, HW)          # spatial axis on lanes, C on sublanes
    w1t = jnp.asarray(w1, jnp.float32).T   # (C, hidden)
    w2t = jnp.asarray(w2, jnp.float32).T   # (hidden, C)
    hidden = w1t.shape[1]
    weight_bytes = (w1t.size + w2t.size) * 4

    per_image_bytes = C * HW * itemsize
    inv_hw = 1.0 / float(HW)

    # Two-pass when a single-image slab blows the per-block budget, or when
    # B == 1 (fused grid would be 1: no pipelining, one idle v7x core) and the
    # spatial axis is large enough to chunk into >= 2 lane-dense pieces.
    use_two_pass = (per_image_bytes > target_block_bytes) or (B == 1 and HW >= 256)

    if not use_two_pass:
        # Batch tiling: stay within the block byte budget and keep >= 4 grid
        # steps whenever B allows (hides DMA prologue/epilogue, balances the
        # two v7x TensorCores).
        TB = max(1, min(B, target_block_bytes // per_image_bytes, pl.cdiv(B, 4)))
        grid_b = pl.cdiv(B, TB)
        block_bytes = TB * per_image_bytes
        # Working set ~= 2x(in tile) + 2x(out tile) + ~2 block-sized temps
        # + double-buffered weights, plus headroom.
        vmem_limit = max(16 * 1024 * 1024,
                         min(96 * 1024 * 1024,
                             6 * block_bytes + 2 * weight_bytes + 4 * 1024 * 1024))

        cost = pl.CostEstimate(
            flops=int(2 * B * C * HW + 4 * B * C * hidden + B * C * HW),
            transcendentals=int(B * C),
            bytes_accessed=int(2 * B * C * HW * itemsize + 2 * weight_bytes),
        )
        out3 = pl.pallas_call(
            functools.partial(_se_fused_kernel, inv_hw=inv_hw),
            out_shape=jax.ShapeDtypeStruct((B, C, HW), dtype),
            grid_spec=pltpu.PrefetchScalarGridSpec(
                num_scalar_prefetch=0,
                grid=(grid_b,),
                in_specs=[
                    pl.BlockSpec((TB, C, HW), lambda b: (b, 0, 0)),
                    pl.BlockSpec((C, hidden), lambda b: (0, 0)),
                    pl.BlockSpec((hidden, C), lambda b: (0, 0)),
                ],
                out_specs=pl.BlockSpec((TB, C, HW), lambda b: (b, 0, 0)),
            ),
            compiler_params=pltpu.CompilerParams(
                dimension_semantics=("parallel",),
                vmem_limit_bytes=int(vmem_limit),
            ),
            cost_estimate=cost,
        )(x3, w1t, w2t)
        return out3.reshape(B, C, H, W)

    # ---------------- two-pass path ----------------
    # Lane-dense HW chunks (multiples of 128; last chunk may be ragged).
    if HW <= 128:
        HC = HW
    else:
        hc_budget = max(128, target_block_bytes // (C * itemsize))
        HC = max(128, min(hc_budget, pl.cdiv(HW, 4)))
        HC = (HC // 128) * 128
        if HC >= HW:
            HC = HW
    grid_h = pl.cdiv(HW, HC)
    chunk_bytes = C * HC * itemsize
    vmem_limit = max(16 * 1024 * 1024,
                     min(96 * 1024 * 1024,
                         5 * chunk_bytes + 2 * weight_bytes + 4 * 1024 * 1024))

    gates = pl.pallas_call(
        functools.partial(_se_pool_gate_kernel, hw=HW, inv_hw=inv_hw),
        out_shape=jax.ShapeDtypeStruct((B, C, 1), jnp.float32),
        grid_spec=pltpu.PrefetchScalarGridSpec(
            num_scalar_prefetch=0,
            grid=(B, grid_h),
            in_specs=[
                pl.BlockSpec((1, C, HC), lambda b, h: (b, 0, h)),
                pl.BlockSpec((C, hidden), lambda b, h: (0, 0)),
                pl.BlockSpec((hidden, C), lambda b, h: (0, 0)),
            ],
            out_specs=pl.BlockSpec((1, C, 1), lambda b, h: (b, 0, 0)),
        ),
        compiler_params=pltpu.CompilerParams(
            dimension_semantics=("parallel", "arbitrary"),
            vmem_limit_bytes=int(vmem_limit),
        ),
    )(x3, w1t, w2t)

    out3 = pl.pallas_call(
        _se_scale_kernel,
        out_shape=jax.ShapeDtypeStruct((B, C, HW), dtype),
        grid_spec=pltpu.PrefetchScalarGridSpec(
            num_scalar_prefetch=0,
            grid=(B, grid_h),
            in_specs=[
                pl.BlockSpec((1, C, HC), lambda b, h: (b, 0, h)),
                pl.BlockSpec((1, C, 1), lambda b, h: (b, 0, 0)),
            ],
            out_specs=pl.BlockSpec((1, C, HC), lambda b, h: (b, 0, h)),
        ),
        compiler_params=pltpu.CompilerParams(
            dimension_semantics=("parallel", "parallel"),
            vmem_limit_bytes=int(vmem_limit),
        ),
    )(x3, gates)
    return out3.reshape(B, C, H, W)


# --------------------------------------------------------------------------
# Pure-JAX reference
# --------------------------------------------------------------------------
def se_layer_ref(x_nchw, w1, w2):
    xf = x_nchw.astype(jnp.float32)
    pooled = jnp.mean(xf, axis=(2, 3))                # (B, C)
    h = jnp.maximum(pooled @ w1.T, 0.0)               # (B, hidden)
    s = jax.nn.sigmoid(h @ w2.T)                      # (B, C)
    return xf * s[:, :, None, None]


def _check(name, out, ref, atol, rtol):
    assert out.shape == ref.shape, f"{name}: shape {out.shape} vs {ref.shape}"
    ok = jnp.allclose(out.astype(jnp.float32), ref.astype(jnp.float32),
                      atol=atol, rtol=rtol)
    assert bool(ok), f"{name}: mismatch vs reference"


if __name__ == "__main__":
    # SELayer(channel=64, r=16): hidden = 64 // 16 = 4.
    B, C, H, W = 8, 64, 12, 12      # HW=144: not a multiple of 128 (ragged lanes)
    r = 16
    hidden = C // r

    key = jax.random.PRNGKey(0)
    kx, k1, k2, kz = jax.random.split(key, 4)
    x = jax.random.normal(kx, (B, C, H, W), dtype=jnp.float32)
    # Deterministic synthetic nn.Linear(..., bias=False) weights.
    w1 = jax.random.normal(k1, (hidden, C), dtype=jnp.float32) * 0.1
    w2 = jax.random.normal(k2, (C, hidden), dtype=jnp.float32) * 0.1

    # 1) Fused path, f32, even 4-step grid (TB=2).
    out = jax.block_until_ready(se_layer(x, w1, w2))
    _check("fused_f32", out, se_layer_ref(x, w1, w2), atol=1e-5, rtol=1e-5)

    # 2) Fused path, f32, ragged last batch block (B=5, TB=2 -> 3 grid steps).
    x5 = x[:5]
    out5 = jax.block_until_ready(se_layer(x5, w1, w2))
    _check("fused_f32_ragged_batch", out5, se_layer_ref(x5, w1, w2),
           atol=1e-5, rtol=1e-5)

    # 3) Fused path, bf16 I/O (MXU ones-matmul pooling, f32 accumulation).
    x_bf16 = x.astype(jnp.bfloat16)
    out_bf16 = jax.block_until_ready(se_layer(x_bf16, w1, w2))
    _check("fused_bf16", out_bf16, se_layer_ref(x_bf16, w1, w2),
           atol=3e-2, rtol=3e-2)

    # 4) Two-pass fallback, f32, B=1 with HW=576 (5 chunks, ragged tail of 64).
    x1 = jax.random.normal(kz, (1, C, 24, 24), dtype=jnp.float32)
    out1 = jax.block_until_ready(se_layer(x1, w1, w2))
    _check("two_pass_f32", out1, se_layer_ref(x1, w1, w2), atol=1e-5, rtol=1e-5)

    # 5) Two-pass fallback, bf16 I/O.
    x1_bf16 = x1.astype(jnp.bfloat16)
    out1_bf16 = jax.block_until_ready(se_layer(x1_bf16, w1, w2))
    _check("two_pass_bf16", out1_bf16, se_layer_ref(x1_bf16, w1, w2),
           atol=3e-2, rtol=3e-2)

    print("KERNEL_OK")
</pallas_src>

<mosaic_0001>
module attributes {stable_mosaic.version = 11 : i64} {
  func.func @_se_fused_kernel(%arg0: i32, %arg1: memref<2x64x144xf32, #tpu.memory_space<vmem>>, %arg2: memref<64x4xf32, #tpu.memory_space<vmem>>, %arg3: memref<4x64xf32, #tpu.memory_space<vmem>>, %arg4: memref<2x64x144xf32, #tpu.memory_space<vmem>>) attributes {dimension_semantics = [#tpu.dimension_semantics<parallel>], iteration_bounds = array<i64: 4>, scalar_prefetch = 0 : i64, scratch_operands = 0 : i64, tpu.core_type = #tpu.core_type<tc>, window_params = [{transform_indices = @transform_0, window_bounds = array<i64: 2, 64, 144>}, {pipeline_mode = #tpu.pipeline_mode<synchronous>, transform_indices = @transform_1, window_bounds = array<i64: 64, 4>}, {pipeline_mode = #tpu.pipeline_mode<synchronous>, transform_indices = @transform_2, window_bounds = array<i64: 4, 64>}, {transform_indices = @transform_3, window_bounds = array<i64: 2, 64, 144>}]} {
    %c0 = arith.constant 0 : index
    %c0_0 = arith.constant 0 : index
    %c0_1 = arith.constant 0 : index
    %0 = vector.load %arg1[%c0, %c0_0, %c0_1] : memref<2x64x144xf32, #tpu.memory_space<vmem>>, vector<2x64x144xf32>
    %cst = arith.constant dense<0.000000e+00> : vector<2x64xf32>
    %1 = vector.multi_reduction <add>, %0, %cst [2] : vector<2x64x144xf32> to vector<2x64xf32>
    %cst_2 = arith.constant 0.0069444445 : f32
    %2 = vector.broadcast %cst_2 : f32 to vector<2x64xf32>
    %3 = arith.mulf %1, %2 : vector<2x64xf32>
    %c0_3 = arith.constant 0 : index
    %c0_4 = arith.constant 0 : index
    %4 = vector.load %arg2[%c0_3, %c0_4] : memref<64x4xf32, #tpu.memory_space<vmem>>, vector<64x4xf32>
    %cst_5 = arith.constant dense<0.000000e+00> : vector<2x4xf32>
    %5 = tpu.matmul %3, %4, %cst_5 {dimension_numbers = #tpu.dot_dimension_numbers<[1], [0], [0], [1], [0, 0, 1, 1], [], []>} : vector<2x64xf32>, vector<64x4xf32>, vector<2x4xf32> -> vector<2x4xf32>
    %cst_6 = arith.constant 0.000000e+00 : f32
    %6 = vector.broadcast %cst_6 : f32 to vector<2x4xf32>
    %7 = arith.maximumf %5, %6 : vector<2x4xf32>
    %c0_7 = arith.constant 0 : index
    %c0_8 = arith.constant 0 : index
    %8 = vector.load %arg3[%c0_7, %c0_8] : memref<4x64xf32, #tpu.memory_space<vmem>>, vector<4x64xf32>
    %cst_9 = arith.constant dense<0.000000e+00> : vector<2x64xf32>
    %9 = tpu.matmul %7, %8, %cst_9 {dimension_numbers = #tpu.dot_dimension_numbers<[1], [0], [0], [1], [0, 0, 1, 1], [], []>} : vector<2x4xf32>, vector<4x64xf32>, vector<2x64xf32> -> vector<2x64xf32>
    %10 = arith.negf %9 : vector<2x64xf32>
    %11 = math.exp %10 : vector<2x64xf32>
    %cst_10 = arith.constant 1.000000e+00 : f32
    %12 = vector.broadcast %cst_10 : f32 to vector<2x64xf32>
    %13 = arith.addf %12, %11 : vector<2x64xf32>
    %14 = arith.divf %12, %13 : vector<2x64xf32>
    %15 = vector.shape_cast %14 : vector<2x64xf32> to vector<2x64x1xf32>
    %16 = vector.broadcast %15 : vector<2x64x1xf32> to vector<2x64x144xf32>
    %17 = arith.mulf %0, %16 : vector<2x64x144xf32>
    %c0_11 = arith.constant 0 : index
    %c0_12 = arith.constant 0 : index
    %c0_13 = arith.constant 0 : index
    %18 = vector.load %arg4[%c0_11, %c0_12, %c0_13] : memref<2x64x144xf32, #tpu.memory_space<vmem>>, vector<2x64x144xf32>
    tpu.vector_store %arg4[%c0_11, %c0_12, %c0_13], %17 {strides = array<i32>} : memref<2x64x144xf32, #tpu.memory_space<vmem>>, vector<2x64x144xf32>,
    return
  }
  func.func @transform_0(%arg0: i32) -> (i32, i32, i32) {
    %c0_i32 = arith.constant 0 : i32
    %c0_i32_0 = arith.constant 0 : i32
    %c0_i32_1 = arith.constant 0 : i32
    return %arg0, %c0_i32, %c0_i32_0 : i32, i32, i32
  }
  func.func @transform_1(%arg0: i32) -> (i32, i32) {
    %c0_i32 = arith.constant 0 : i32
    %c0_i32_0 = arith.constant 0 : i32
    %c0_i32_1 = arith.constant 0 : i32
    return %c0_i32, %c0_i32_0 : i32, i32
  }
  func.func @transform_2(%arg0: i32) -> (i32, i32) {
    %c0_i32 = arith.constant 0 : i32
    %c0_i32_0 = arith.constant 0 : i32
    %c0_i32_1 = arith.constant 0 : i32
    return %c0_i32, %c0_i32_0 : i32, i32
  }
  func.func @transform_3(%arg0: i32) -> (i32, i32, i32) {
    %c0_i32 = arith.constant 0 : i32
    %c0_i32_0 = arith.constant 0 : i32
    %c0_i32_1 = arith.constant 0 : i32
    return %arg0, %c0_i32, %c0_i32_0 : i32, i32, i32
  }
}

</mosaic_0001>

<bundles_post_ra>
// kernel: tpu_custom_call.1
= control target key start
LH: loop header
LB: loop body
LE: loop exit
PB: predicated region body
PF: predicated region fallthrough
CT: control target
= control target key end

     0   :  { %8 = vsyncpa [#allocation3], 0  ;;  %s1505_s0 = inlined_call_operand.hbm [shape: f32[8,64,144], index: 0, kind: input, shape index: {}]   ;;  %s1506_s1 = inlined_call_operand.vmem [shape: f32[64,4], index: 1, kind: input, shape index: {}]   ;;  %s1507_s2 = inlined_call_operand.vmem [shape: f32[4,64], index: 2, kind: input, shape index: {}]   ;;  %s1508_s3 = inlined_call_operand.hbm [shape: f32[8,64,144], index: 3, kind: output, shape index: {}]  }
   0x1   :  { %10 = vsyncpa [#allocation3 + $0x1], 0 }
   0x2   :  { %11 = vsyncpa [#allocation4], 0 }
   0x3   :  { %13 = vsyncpa [#allocation4 + $0x1], 0  ;;  %s1061_s12 = smov 0   ;;  %s1063_s13 = smov 0  }
   0x4   :  { %s1065_s14 = smov 0   ;;  %s1067_s15 = smov 0  }
   0x5 LB: > { %s1082_s16 = sadd.s32 4294967295, %s1030_s15   ;;  %s806_s17 = sadd.s32 4294967294, %s1030_s15   ;;  %s1030_s15 = sphi %s1067_s15, %s1541_s15   ;;  %s1026_s14 = sphi %s1065_s14, %s1540_s14   ;;  %s1022_s13 = sphi %s1063_s13, %s1539_s13   ;;  %s1018_s12 = sphi %s1061_s12, %s1538_s12  }
   0x6   : > { %s1086_s18 = sadd.s32 1, %s1030_s15   ;;  %s26_s19 = sadd.s32 1, %s1026_s14 }
   0x7   : > { %s23_s20 = ssub.s32 %s1030_s15, %s1086_s18  ;;  %p33_p0 = scmp.ne.s32.totalorder %s1026_s14, %s1022_s13 }
   0x8   : > { %p24_p1 = scmp.eq.s32.totalorder %s23_s20, 0  ;;  %p34_p2 = scmp.eq.s32.totalorder %s1030_s15, 0 }
   0x9   : > { %p39_p3 = scmp.ne.s32.totalorder %s1022_s13, %s1018_s12  ;;  %p40_p4 = scmp.eq.s32.totalorder %s1082_s16, 0 }
   0xa   : > { %s1098_s21 = scalar_select %p24_p1, %s1026_s14, %s26_s19  }
   0xb   : > { %p1100_p5 = por %p34_p2, %p33_p0  ;;  %p1104_p6 = por %p40_p4, %p39_p3 }
   0xc   : > { %p105_p7 = scmp.eq.s32.totalorder %s1082_s16, 3  ;;  %p111_p8 = scmp.eq.s32.totalorder %s806_s17, 3 }
   0xd   : > { %p889_p9 = scmp.lt.s32.totalorder %s1030_s15, 4  ;;  %s137_s26 = sand.u32 1, %s1026_s14  }
   0xe   : > { %p1110_p10 = por %p105_p7, %p33_p0  ;;  %p1114_p11 = por %p111_p8, %p39_p3 }
   0xf   : > { %s827_s27 = sshll.u32 %s1030_s15, 12  ;;  %s809_s28 = sshll.u32 %s137_s26, 8 }
  0x10   : > { %s1519_s24 = scalar_select %p1110_p10, 1, 0 }
  0x11   : > { %s1520_s25 = scalar_select %p1114_p11, 1, 0 }
  0x12   : > { %s1123_s4 = scalar_lea.hbm %s1505_s0, %s827_s27  ;;  %s141_s5 = scalar_lea.vmem [#allocation2], %s809_s28 }
  0x13   : > { %s149_s6 = sshll.u32 %s141_s5, 4  ;;  %p1127_p12 = pnand %p889_p9, %p1100_p5  ;;  %s1131_s6 = int_to_ptr.vmem [resolvable:$true] %s149_s6 }
  0x14   : > { %s1133_s8 = scalar_lea.sflag [#allocation3], %s137_s26  ;;  %s934_s9 = scalar_lea.hbm %s1123_s4, 4096 }
  0x15   : > { %p935_p13 = scmp.ne.s32.totalorder %s1123_s4, %s934_s9  ;;  %p936_p0 = pneg %p1127_p12 }
  0x16   : > { %s939_s17 = scalar_lea.hbm %s1505_s0, 16384  ;;  %p940_p3 = scmp.lt.u32.totalorder %s1123_s4, %s1505_s0 }
  0x17   : > { %p937_p1 = pnand %p936_p0, %p935_p13  ;;  %p941_p4 = scmp.lt.u32.totalorder %s939_s17, %s934_s9 }
  0x18   : > { %p943_p7 = scmp.lt.u32.totalorder %s934_s9, %s1123_s4 }
  0x19   : > { %p938_p2 = pneg %p937_p1  ;;  %p942_p5 = por %p941_p4, %p940_p3 }
  0x1b   : > { %p944_p8 = por %p943_p7, %p942_p5 }
  0x1d   : > { %p945_p9 = pnand %p944_p8, %p938_p2 }
  0x1f   : > { %948 = shalt.err (!%p945_p9)
}
  0x20   : > { %s949_s22 = scalar_lea.vmem %s1131_s6, 4096  ;;  %s1032_s26 = smov [#allocation2]  }
  0x21   : > { %p950_p13 = scmp.ne.s32.totalorder %s1131_s6, %s949_s22  ;;  %s954_s27 = sshll.u32 %s1032_s26, 4  ;;  %s955_s27 = int_to_ptr.vmem [resolvable:$false] %s954_s27 }
  0x22   : > { %s956_s28 = scalar_lea.vmem %s955_s27, 8192  ;;  %p957_p10 = scmp.lt.s32.totalorder %s1131_s6, %s955_s27 }
  0x23   : > { %p952_p1 = pnand %p950_p13, %p936_p0  ;;  %p958_p3 = scmp.lt.s32.totalorder %s956_s28, %s949_s22 }
  0x25   : > { %p953_p11 = pneg %p952_p1  ;;  %p959_p4 = por %p958_p3, %p957_p10 }
  0x27   : > { %p960_p5 = pnand %p959_p4, %p953_p11 }
  0x29   : > { %963 = shalt.err (!%p960_p5)
}
  0x2a   : > { %s1033_s29 = smov 256   ;;  %s1034_s30 = smov 16  }
  0x2b   : > { %884 = dma.hbm_to_vmem [thread:$0]  (!%p1127_p12), %s1123_s4, 4096, %s1131_s6, %s1133_s8, %s1033_s29, %s1033_s29, %s1034_s30  }
  0x2c   : > { %p813_p0 = scmp.ge.s32.totalorder %s1030_s15, 1  ;;  %p157_p2 = scmp.lt.s32.totalorder %s1030_s15, 5 }
  0x2e   : > { %p158_p7 = pnand %p813_p0, %p157_p2 }
  0x30   : > { %161 = sbr.rel (%p158_p7) target bundleno = 858 (0x35a), region = 32 }
  0x37   : > { %s1164_s5 = sand.u32 1, %s1022_s13  }
  0x38   : > { %s814_s9 = sshll.u32 %s1164_s5, 8  ;;  %s164_s10 = scalar_lea.sflag [#allocation3], %s1164_s5 }
  0x39   : > { %s1170_s11 = scalar_lea.vmem [#allocation2], %s814_s9 }
  0x3a   : > { %1009 = dma.done.wait (%p1104_p6), %s164_s10, 4096  }
  0x3b   : > { %1011 = vsyncadd (%p1104_p6), %s164_s10, 4294963200  ;;  %vm224_vm0 = vcmask 130048   ;;  %v1177_v0 = vld [vmem:[%s1170_s11 + $0x80] sm:$0xff]  ;;  %v1180_v1 = vld [vmem:[%s1170_s11 + $0x88] sm:$0xff]  ;;  %vm1036_vm1 = vmmov 0   ;;  %vm340_vm2 = vcmask 130112  }
  0x3c   : > { %v1183_v2 = vld [vmem:[%s1170_s11] sm:$0xff]  ;;  %v257_v3 = vsel %vm224_vm0, %v1180_v1, 0.0  ;;  %v1188_v4 = vld [vmem:[%s1170_s11 + $0x8] sm:$0xff]  ;;  %v1191_v5 = vld [vmem:[%s1170_s11 + $0x90] sm:$0xff]  ;;  %vm347_vm3 = vcmask 195712   ;;  %vm354_vm4 = vcmask 261312  }
  0x3d   : > { %v1194_v6 = vld [vmem:[%s1170_s11 + $0x98] sm:$0xff]  ;;  %v258_v7 = vadd.f32 %v257_v3, %v1177_v0  ;;  %v225_v8 = vsel %vm224_vm0, %v1188_v4, 0.0  ;;  %v1202_v10 = vld [vmem:[%s1170_s11 + $0x10] sm:$0xff]  ;;  %v1211_v14 = vld [vmem:[%s1170_s11 + $0xa8] sm:$0xff]  ;;  %vm361_vm5 = vcmask 326912   ;;  %vm368_vm6 = vcmask 392512  }
  0x3e   : > { %v261_v9 = vsel %vm224_vm0, %v1194_v6, 0.0  ;;  %v1205_v11 = vld [vmem:[%s1170_s11 + $0x18] sm:$0xff]  ;;  %v226_v12 = vadd.f32 %v225_v8, %v1183_v2  ;;  %v1214_v15 = vld [vmem:[%s1170_s11 + $0x28] sm:$0xff]  ;;  %v1219_v18 = vld [vmem:[%s1170_s11 + $0xa0] sm:$0xff]  ;;  %v265_v19 = vsel %vm224_vm0, %v1211_v14, 0.0  ;;  %vm375_vm7 = vcmask 458112  }
  0x3f   : > { %v229_v13 = vsel %vm224_vm0, %v1205_v11, 0.0  ;;  %259 = vadd.xlane.f32.xlu1 %v258_v7  ;;  %v262_v16 = vadd.f32 %v261_v9, %v1191_v5  ;;  %v1224_v20 = vld [vmem:[%s1170_s11 + $0x20] sm:$0xff]  ;;  %v233_v21 = vsel %vm224_vm0, %v1214_v15, 0.0  ;;  %v1229_v22 = vld [vmem:[%s1170_s11 + $0xb8] sm:$0xff]  ;;  %v266_v24 = vadd.f32 %v265_v19, %v1219_v18  ;;  %v1237_v26 = vld [vmem:[%s1170_s11 + $0xb0] sm:$0xff]  ;;  %s1377_s6 = scalar_lea.vmem [#allocation5], %s814_s9 }
  0x40   : > { %227 = vadd.xlane.f32.xlu0 %v226_v12  ;;  %v230_v17 = vadd.f32 %v229_v13, %v1202_v10  ;;  %1522 = vst [vmem:[#allocation8_spill] sm:$0xff] %v1229_v22  ;;  %v1232_v23 = vld [vmem:[%s1170_s11 + $0x38] sm:$0xff]  ;;  %v234_v25 = vadd.f32 %v233_v21, %v1224_v20  ;;  %v269_v27 = vsel %vm224_vm0, %v1229_v22, 0.0  ;;  %v1242_v28 = vld [vmem:[%s1170_s11 + $0x30] sm:$0xff]  ;;  %v1247_v30 = vld [vmem:[%s1170_s11 + $0xc8] sm:$0xff]  ;;  %v1035_v9 = vmov 0.0|0.0  }
  0x41   : > { %v237_v29 = vsel %vm224_vm0, %v1232_v23, 0.0  ;;  %v1250_v31 = vld [vmem:[%s1170_s11 + $0x48] sm:$0xff]  ;;  %v270_v32 = vadd.f32 %v269_v27, %v1237_v26  ;;  %v1255_v34 = vld [vmem:[%s1170_s11 + $0xc0] sm:$0xff]  ;;  %v273_v35 = vsel %vm224_vm0, %v1247_v30, 0.0  ;;  %v1265_v38 = vld [vmem:[%s1170_s11 + $0xd8] sm:$0xff]  ;;  %865 = vmatprep.subr.bf16.mxu0 %v1035_v9  ;;  %vm382_vm8 = vcmask 523712  }
  0x42   : > { %v238_v33 = vadd.f32 %v237_v29, %v1242_v28  ;;  %v1260_v36 = vld [vmem:[%s1170_s11 + $0x40] sm:$0xff]  ;;  %v241_v37 = vsel %vm224_vm0, %v1250_v31, 0.0  ;;  %1523 = vst [vmem:[#allocation9_spill] sm:$0xff] %v1265_v38  ;;  %v1268_v39 = vld [vmem:[%s1170_s11 + $0x58] sm:$0xff]  ;;  %v274_v40 = vadd.f32 %v273_v35, %v1255_v34  ;;  %v1273_v42 = vld [vmem:[%s1170_s11 + $0xd0] sm:$0xff]  ;;  %v277_v43 = vsel %vm224_vm0, %v1265_v38, 0.0 }
  0x43   : > { %263 = vadd.xlane.f32.xlu1 %v262_v16  ;;  %v242_v41 = vadd.f32 %v241_v37, %v1260_v36  ;;  %1524 = vst [vmem:[#allocation10_spill] sm:$0xff] %v1273_v42  ;;  %v1278_v44 = vld [vmem:[%s1170_s11 + $0x50] sm:$0xff]  ;;  %v245_v45 = vsel %vm224_vm0, %v1268_v39, 0.0  ;;  %v1283_v46 = vld [vmem:[%s1170_s11 + $0xe8] sm:$0xff]  ;;  %v278_v48 = vadd.f32 %v277_v43, %v1273_v42  ;;  %v1291_v50 = vld [vmem:[%s1170_s11 + $0xe0] sm:$0xff]  ;;  %v1037_v29 = vmov 0.0  }
  0x44   : > { %231 = vadd.xlane.f32.xlu0 %v230_v17  ;;  %1525 = vst [vmem:[#allocation11_spill] sm:$0xff] %v1283_v46  ;;  %v1286_v47 = vld [vmem:[%s1170_s11 + $0x68] sm:$0xff]  ;;  %v246_v49 = vadd.f32 %v245_v45, %v1278_v44  ;;  %1526 = vst [vmem:[#allocation12_spill] sm:$0xff] %v1291_v50  ;;  %v281_v51 = vsel %vm224_vm0, %v1283_v46, 0.0  ;;  %v1296_v52 = vld [vmem:[%s1170_s11 + $0x60] sm:$0xff]  ;;  %857 = vmatprep.mubr.msk.f32.mxu0 %vm1036_vm1, %v1037_v29  ;;  %vm423_vm9 = vcmask 1041409  }
  0x45   : > { %v249_v53 = vsel %vm224_vm0, %v1286_v47, 0.0  ;;  %v1301_v54 = vld [vmem:[%s1170_s11 + $0xf8] sm:$0xff]  ;;  %v282_v56 = vadd.f32 %v281_v51, %v1291_v50  ;;  %v1309_v58 = vld [vmem:[%s1170_s11 + $0xf0] sm:$0xff]  ;;  %v305_v3 = vld [vmem:[%s1506_s1] sm:$0xff]  ;;  %860 = vmatprep.subr.mxu1 %v1037_v29  ;;  %862 = vmatprep.mubr.msk.f32.mxu1 %vm1036_vm1, %v1037_v29  ;;  %vm425_vm10 = vcmask 523264   ;;  %vm504_vm11 = vcmask 1043456  }
  0x46   : > { %1527 = vst [vmem:[#allocation13_spill] sm:$0xff] %v1301_v54  ;;  %v1304_v55 = vld [vmem:[%s1170_s11 + $0x78] sm:$0xff]  ;;  %v250_v57 = vadd.f32 %v249_v53, %v1296_v52  ;;  %1528 = vst [vmem:[#allocation14_spill] sm:$0xff] %v1309_v58  ;;  %v285_v59 = vsel %vm224_vm0, %v1301_v54, 0.0  ;;  %v1314_v60 = vld [vmem:[%s1170_s11 + $0x70] sm:$0xff]  ;;  %vm500_vm12 = vcmask 31744  }
  0x47   : > { %267 = vadd.xlane.f32.xlu1 %v266_v24  ;;  %v253_v61 = vsel %vm224_vm0, %v1304_v55, 0.0  ;;  %v286_v62 = vadd.f32 %v285_v59, %v1309_v58  ;;  %v306_v7 = vld [vmem:[%s1506_s1 + $0x8] sm:$0xff]  ;;  %v307_v12 = vld [vmem:[%s1506_s1 + $0x10] sm:$0xff]  ;;  %v308_v13 = vld [vmem:[%s1506_s1 + $0x18] sm:$0xff]  ;;  %s829_s9 = sshll.u32 %s1082_s16, 12  ;;  %s733_s7 = sshll.u32 %s1377_s6, 4  ;;  %s1457_s7 = int_to_ptr.vmem [resolvable:$true] %s733_s7 }
  0x48   : > { %235 = vadd.xlane.f32.xlu0 %v234_v25  ;;  %v254_v63 = vadd.f32 %v253_v61, %v1314_v60  ;;  %v866_v8 = vpack.c.bf16 %v306_v7, %v305_v3  ;;  %v869_v16 = vpack.c.bf16 %v308_v13, %v307_v12  ;;  %v309_v17 = vld [vmem:[%s1506_s1 + $0x20] sm:$0xff]  ;;  %v310_v19 = vld [vmem:[%s1506_s1 + $0x28] sm:$0xff]  ;;  %v311_v24 = vld [vmem:[%s1506_s1 + $0x30] sm:$0xff]  ;;  %s1455_s19 = scalar_lea.hbm %s1508_s3, %s829_s9  ;;  %s719_s16 = scalar_lea.sflag [#allocation4], %s1164_s5 }
  0x49   : > { %v872_v21 = vpack.c.bf16 %v310_v19, %v309_v17  ;;  %v312_v25 = vld [vmem:[%s1506_s1 + $0x38] sm:$0xff]  ;;  %s964_s20 = scalar_lea.vmem %s1457_s7, 4096  ;;  %p1536_p10 = scmp.ne.s32.totalorder %s1519_s24, 0 }
  0x4a   : > { %867 = vmatpush3.bf16.msra.mxu0 %v866_v8  ;;  %v875_v27 = vpack.c.bf16 %v312_v25, %v311_v24  ;;  %p965_p6 = scmp.ne.s32.totalorder %s1457_s7, %s964_s20  ;;  %s1038_s22 = smov [#allocation5]  }
  0x4b   : > { %271 = vadd.xlane.f32.xlu1 %v270_v32  ;;  %868 = vmatprep.subr.bf16.mxu0 %v1035_v9  ;;  %s968_s26 = sshll.u32 %s1038_s22, 4  ;;  %s969_s26 = int_to_ptr.vmem [resolvable:$false] %s968_s26 }
  0x4c   : > { %239 = vadd.xlane.f32.xlu0 %v238_v33  ;;  %p966_p11 = pnand %p965_p6, %p1536_p10  ;;  %s970_s27 = scalar_lea.vmem %s969_s26, 8192 }
  0x4d   : > { %p971_p8 = scmp.lt.s32.totalorder %s1457_s7, %s969_s26  ;;  %p972_p9 = scmp.lt.s32.totalorder %s970_s27, %s964_s20 }
  0x4e   : > { %870 = vmatpush3.bf16.msra.mxu0 %v869_v16  ;;  %p967_p12 = pneg %p966_p11 }
  0x4f   : > { %275 = vadd.xlane.f32.xlu1 %v274_v40  ;;  %871 = vmatprep.subr.bf16.mxu0 %v1035_v9  ;;  %v329_v40 = vlaneseq  ;;  %p973_p13 = por %p972_p9, %p971_p8 }
  0x50   : > { %243 = vadd.xlane.f32.xlu0 %v242_v41 }
  0x51   : > { %v330_v45 = vand.u32 127, %v329_v40  ;;  %p974_p1 = pnand %p973_p13, %p967_p12 }
  0x52   : > { %873 = vmatpush3.bf16.msra.mxu0 %v872_v21 }
  0x53   : > { %279 = vadd.xlane.f32.xlu1 %v278_v48  ;;  %874 = vmatprep.subr.bf16.mxu0 %v1035_v9  ;;  %v335_v53 = vadd.s32 4294967288, %v330_v45  ;;  %v356_v59 = vadd.s32 4294967264, %v330_v45  ;;  %v363_v3 = vadd.s32 4294967256, %v330_v45  ;;  %v370_v9 = vadd.s32 4294967248, %v330_v45 }
  0x54   : > { %247 = vadd.xlane.f32.xlu0 %v246_v49  ;;  %v1344_v49 = vshrl.u32 %v329_v40, 7 }
  0x56   : > { %876 = vmatpush3.bf16.msra.mxu0 %v875_v27  ;;  %v338_v7 = vsub.s32 %v335_v53, %v1344_v49  ;;  %v359_v16 = vsub.s32 %v356_v59, %v1344_v49  ;;  %v366_v29 = vsub.s32 %v363_v3, %v1344_v49  ;;  %v377_v59 = vadd.s32 4294967240, %v330_v45 }
  0x57   : > { %283 = vadd.xlane.f32.xlu1 %v282_v56  ;;  %v342_v56 = vadd.s32 4294967280, %v330_v45 }
  0x58   : > { %251 = vadd.xlane.f32.xlu0 %v250_v57  ;;  %v349_v57 = vadd.s32 4294967272, %v330_v45 }
  0x59   : > { %v345_v8 = vsub.s32 %v342_v56, %v1344_v49 }
  0x5a   : > { %v352_v13 = vsub.s32 %v349_v57, %v1344_v49 }
  0x5b   : > { %287 = vadd.xlane.f32.xlu1 %v286_v62  ;;  %v333_v62 = vsub.s32 %v330_v45, %v1344_v49  ;;  %v380_v45 = vsub.s32 %v377_v59, %v1344_v49 }
  0x5c   : > { %255 = vadd.xlane.f32.xlu0 %v254_v63 }
  0xcc   : > { %v260_v32 = vpop.xlane.xlu1 %259 }
  0xcd   : > { %v228_v33 = vpop.xlane.xlu0 %227  ;;  %v297_v24 = vmul.f32 0.0069444445, %v260_v32 }
  0xce   : > { %v289_v53 = vmul.f32 0.0069444445, %v228_v33 }
  0xcf   : > { %v387_v32 = vrot.slane %v297_v24, %v333_v62 }
  0xd0   : > { %v264_v35 = vpop.xlane.xlu1 %263  ;;  %v334_v22 = vrot.slane %v289_v53, %v333_v62 }
  0xd1   : > { %v232_v37 = vpop.xlane.xlu0 %231  ;;  %v298_v12 = vmul.f32 0.0069444445, %v264_v35  ;;  %v373_v35 = vsub.s32 %v370_v9, %v1344_v49 }
  0xd2   : > { %v290_v17 = vmul.f32 0.0069444445, %v232_v37 }
  0xd3   : > { %v391_v57 = vrot.slane %v298_v12, %v338_v7 }
  0xd4   : > { %v268_v41 = vpop.xlane.xlu1 %267  ;;  %v339_v37 = vrot.slane %v290_v17, %v338_v7 }
  0xd5   : > { %v236_v43 = vpop.xlane.xlu0 %235  ;;  %v299_v19 = vmul.f32 0.0069444445, %v268_v41  ;;  %v392_v9 = vsel %vm340_vm2, %v391_v57, %v387_v32  ;;  %v499_v57 = vld [vmem:[%s1507_s2] sm:$0xf] }
  0xd6   : > { %v291_v25 = vmul.f32 0.0069444445, %v236_v43  ;;  %v341_v7 = vsel %vm340_vm2, %v339_v37, %v334_v22  ;;  %861 = vmatpush3.msk.msra.mxu1 %vm504_vm11, %v499_v57 }
  0xd7   : > { %v396_v41 = vrot.slane %v299_v19, %v345_v8 }
  0xd8   : > { %v272_v48 = vpop.xlane.xlu1 %271  ;;  %v346_v43 = vrot.slane %v291_v25, %v345_v8 }
  0xd9   : > { %v240_v51 = vpop.xlane.xlu0 %239  ;;  %v300_v27 = vmul.f32 0.0069444445, %v272_v48  ;;  %v397_v17 = vsel %vm347_vm3, %v396_v41, %v392_v9 }
  0xda   : > { %v292_v56 = vmul.f32 0.0069444445, %v240_v51 }
  0xdb   : > { %v401_v48 = vrot.slane %v300_v27, %v352_v13 }
  0xdc   : > { %v276_v61 = vpop.xlane.xlu1 %275  ;;  %v353_v33 = vrot.slane %v292_v56, %v352_v13 }
  0xdd   : > { %v244_v63 = vpop.xlane.xlu0 %243  ;;  %v301_v54 = vmul.f32 0.0069444445, %v276_v61  ;;  %v402_v62 = vsel %vm354_vm4, %v401_v48, %v397_v17 }
  0xde   : > { %v293_v58 = vmul.f32 0.0069444445, %v244_v63 }
  0xdf   : > { %v406_v51 = vrot.slane %v301_v54, %v359_v16 }
  0xe0   : > { %v280_v21 = vpop.xlane.xlu1 %279  ;;  %v360_v12 = vrot.slane %v293_v58, %v359_v16 }
  0xe1   : > { %v248_v40 = vpop.xlane.xlu0 %247  ;;  %v302_v38 = vmul.f32 0.0069444445, %v280_v21 }
  0xe2   : > { %v294_v42 = vmul.f32 0.0069444445, %v248_v40 }
  0xe3   : > { %v411_v63 = vrot.slane %v302_v38, %v366_v29  ;;  %v407_v38 = vsel %vm361_vm5, %v406_v51, %v402_v62  ;;  %v586_v51 = vsub.s32 0, %v1344_v49 }
  0xe4   : > { %v284_v46 = vpop.xlane.xlu1 %283  ;;  %v367_v19 = vrot.slane %v294_v42, %v366_v29 }
  0xe5   : > { %v303_v50 = vmul.f32 0.0069444445, %v284_v46  ;;  %v252_v3 = vpop.xlane.xlu0 %251  ;;  %v348_v46 = vsel %vm347_vm3, %v346_v43, %v341_v7  ;;  %v412_v16 = vsel %vm368_vm6, %v411_v63, %v407_v38 }
  0xe6   : > { %v295_v61 = vmul.f32 0.0069444445, %v252_v3  ;;  %v355_v25 = vsel %vm354_vm4, %v353_v33, %v348_v46 }
  0xe7   : > { %v416_v21 = vrot.slane %v303_v50, %v373_v35  ;;  %v362_v22 = vsel %vm361_vm5, %v360_v12, %v355_v25  ;;  %v621_v12 = vsub.s32 1, %v1344_v49 }
  0xe8   : > { %v288_v8 = vpop.xlane.xlu1 %287  ;;  %v374_v13 = vrot.slane %v295_v61, %v373_v35  ;;  %v369_v50 = vsel %vm368_vm6, %v367_v19, %v362_v22 }
  0xe9   : > { %v304_v54 = vmul.f32 0.0069444445, %v288_v8  ;;  %v256_v24 = vpop.xlane.xlu0 %255  ;;  %v417_v27 = vsel %vm375_vm7, %v416_v21, %v412_v16 }
  0xea   : > { %v296_v58 = vmul.f32 0.0069444445, %v256_v24  ;;  %v376_v40 = vsel %vm375_vm7, %v374_v13, %v369_v50 }
  0xeb   : > { %v421_v42 = vrot.slane %v304_v54, %v380_v45 }
  0xec   : > { %v381_v29 = vrot.slane %v296_v58, %v380_v45 }
  0xed   : > { %v422_v53 = vsel %vm382_vm8, %v421_v42, %v417_v27  ;;  %v1530_v27 = vld [vmem:[#allocation12_spill] sm:$0xff] }
  0xee   : > { %v383_v56 = vsel %vm382_vm8, %v381_v29, %v376_v40  ;;  %v1531_v29 = vld [vmem:[#allocation11_spill] sm:$0xff] }
  0xef   : > { %v424_v35 = vsel %vm423_vm9, %v422_v53, %v383_v56  ;;  %v1532_v53 = vld [vmem:[#allocation10_spill] sm:$0xff] }
  0xf0   : > { %858 = vmatmul.mubr.msk.f32.vlgmr.msra.gmra.mrb[0].mxu0 %vm425_vm10, %v424_v35  ;;  %v1533_v35 = vld [vmem:[#allocation9_spill] sm:$0xff] }
 0x1c3   : > { %v494_v59 = vpop.f32.mrb[0].mxu0 }
 0x1c4   : > { %v498_v37 = vmax.f32 %v494_v59, 0.0  ;;  %v859_v41 = vpop.f32.mrb[1].mxu0  ;;  %v1534_v59 = vld [vmem:[#allocation14_spill] sm:$0xff] }
 0x1c5   : > { %v1535_v41 = vld [vmem:[#allocation13_spill] sm:$0xff] }
 0x1c6   : > { %863 = vmatmul.mubr.msk.f32.vlgmr.msra.gmra.mrb[0].mxu1 %vm500_vm12, %v498_v37 }
 0x299   : > { %v574_v32 = vpop.f32.mrb[0].mxu1 }
 0x29a   : > { %v819_v43 = vmul.f32 -1.442695, %v574_v32  ;;  %v864_v48 = vpop.f32.mrb[1].mxu1 }
 0x29c   : > { %930 = vpow2.f32 %v819_v43 }
 0x2a6   : > { %v931_v3 = vpop.eup %930 }
 0x2a7   : > { %v581_v33 = vadd.f32 1.0, %v931_v3 }
 0x2a9   : > { %932 = vrcp.f32 %v581_v33 }
 0x2b3   : > { %v933_v61 = vpop.eup %932 }
 0x2b4   : > { %v587_v9 = vrot.slane %v933_v61, %v586_v51  ;;  %v622_v63 = vrot.slane %v933_v61, %v621_v12 }
 0x2b6   : > { %593 = vbcast.lane.b32.xlu1 %v587_v9, 264  ;;  %589 = vbcast.lane.b32.xlu0 %v587_v9, 256 }
 0x2ba   : > { %597 = vbcast.lane.b32.xlu1 %v587_v9, 272  ;;  %605 = vbcast.lane.b32.xlu0 %v587_v9, 288 }
 0x2be   : > { %601 = vbcast.lane.b32.xlu1 %v587_v9, 280  ;;  %613 = vbcast.lane.b32.xlu0 %v587_v9, 304 }
 0x2c2   : > { %609 = vbcast.lane.b32.xlu1 %v587_v9, 296  ;;  %624 = vbcast.lane.b32.xlu0 %v622_v63, 256 }
 0x2c6   : > { %617 = vbcast.lane.b32.xlu1 %v587_v9, 312  ;;  %632 = vbcast.lane.b32.xlu0 %v622_v63, 272 }
 0x2ca   : > { %628 = vbcast.lane.b32.xlu1 %v622_v63, 264  ;;  %640 = vbcast.lane.b32.xlu0 %v622_v63, 288 }
 0x2ce   : > { %636 = vbcast.lane.b32.xlu1 %v622_v63, 280  ;;  %648 = vbcast.lane.b32.xlu0 %v622_v63, 304 }
 0x2d2   : > { %644 = vbcast.lane.b32.xlu1 %v622_v63, 296 }
 0x2d6   : > { %652 = vbcast.lane.b32.xlu1 %v622_v63, 312 }
 0x328   : > { %v594_v45 = vpop.permute.xlu1 %593  ;;  %v590_v7 = vpop.permute.xlu0 %589 }
 0x329   : > { %v656_v17 = vmul.f32 %v594_v45, %v1202_v10  ;;  %v657_v49 = vmul.f32 %v594_v45, %v1205_v11  ;;  %v654_v19 = vmul.f32 %v590_v7, %v1183_v2  ;;  %v655_v21 = vmul.f32 %v590_v7, %v1188_v4 }
 0x32b   : > { %688 = vst [vmem:[%s1377_s6 + $0x10] sm:$0xff] %v656_v17  ;;  %689 = vst.msk [vmem:[%s1377_s6 + $0x18] sm:$0xff] %vm224_vm0, %v657_v49 }
 0x32c   : > { %686 = vst [vmem:[%s1377_s6] sm:$0xff] %v654_v19  ;;  %687 = vst.msk [vmem:[%s1377_s6 + $0x8] sm:$0xff] %vm224_vm0, %v655_v21  ;;  %v598_v2 = vpop.permute.xlu1 %597  ;;  %v606_v4 = vpop.permute.xlu0 %605 }
 0x32d   : > { %v658_v10 = vmul.f32 %v598_v2, %v1224_v20  ;;  %v659_v11 = vmul.f32 %v598_v2, %v1214_v15  ;;  %v662_v8 = vmul.f32 %v606_v4, %v1260_v36  ;;  %v663_v46 = vmul.f32 %v606_v4, %v1250_v31 }
 0x32f   : > { %690 = vst [vmem:[%s1377_s6 + $0x20] sm:$0xff] %v658_v10  ;;  %691 = vst.msk [vmem:[%s1377_s6 + $0x28] sm:$0xff] %vm224_vm0, %v659_v11 }
 0x330   : > { %694 = vst [vmem:[%s1377_s6 + $0x40] sm:$0xff] %v662_v8  ;;  %695 = vst.msk [vmem:[%s1377_s6 + $0x48] sm:$0xff] %vm224_vm0, %v663_v46  ;;  %v602_v62 = vpop.permute.xlu1 %601  ;;  %v614_v13 = vpop.permute.xlu0 %613 }
 0x331   : > { %v660_v20 = vmul.f32 %v602_v62, %v1242_v28  ;;  %v661_v15 = vmul.f32 %v602_v62, %v1232_v23  ;;  %v666_v36 = vmul.f32 %v614_v13, %v1296_v52  ;;  %v667_v31 = vmul.f32 %v614_v13, %v1286_v47 }
 0x333   : > { %692 = vst [vmem:[%s1377_s6 + $0x30] sm:$0xff] %v660_v20  ;;  %693 = vst.msk [vmem:[%s1377_s6 + $0x38] sm:$0xff] %vm224_vm0, %v661_v15 }
 0x334   : > { %698 = vst [vmem:[%s1377_s6 + $0x60] sm:$0xff] %v666_v36  ;;  %699 = vst.msk [vmem:[%s1377_s6 + $0x68] sm:$0xff] %vm224_vm0, %v667_v31  ;;  %v610_v54 = vpop.permute.xlu1 %609  ;;  %v625_v24 = vpop.permute.xlu0 %624 }
 0x335   : > { %v664_v28 = vmul.f32 %v610_v54, %v1278_v44  ;;  %v665_v23 = vmul.f32 %v610_v54, %v1268_v39  ;;  %v670_v52 = vmul.f32 %v625_v24, %v1177_v0  ;;  %v671_v47 = vmul.f32 %v625_v24, %v1180_v1 }
 0x337   : > { %696 = vst [vmem:[%s1377_s6 + $0x50] sm:$0xff] %v664_v28  ;;  %697 = vst.msk [vmem:[%s1377_s6 + $0x58] sm:$0xff] %vm224_vm0, %v665_v23 }
 0x338   : > { %702 = vst [vmem:[%s1377_s6 + $0x80] sm:$0xff] %v670_v52  ;;  %703 = vst.msk [vmem:[%s1377_s6 + $0x88] sm:$0xff] %vm224_vm0, %v671_v47  ;;  %v618_v25 = vpop.permute.xlu1 %617  ;;  %v633_v38 = vpop.permute.xlu0 %632 }
 0x339   : > { %v668_v44 = vmul.f32 %v618_v25, %v1314_v60  ;;  %v669_v39 = vmul.f32 %v618_v25, %v1304_v55  ;;  %v674_v0 = vmul.f32 %v633_v38, %v1219_v18  ;;  %v675_v1 = vmul.f32 %v633_v38, %v1211_v14 }
 0x33b   : > { %700 = vst [vmem:[%s1377_s6 + $0x70] sm:$0xff] %v668_v44  ;;  %701 = vst.msk [vmem:[%s1377_s6 + $0x78] sm:$0xff] %vm224_vm0, %v669_v39 }
 0x33c   : > { %706 = vst [vmem:[%s1377_s6 + $0xa0] sm:$0xff] %v674_v0  ;;  %707 = vst.msk [vmem:[%s1377_s6 + $0xa8] sm:$0xff] %vm224_vm0, %v675_v1  ;;  %v629_v58 = vpop.permute.xlu1 %628  ;;  %v641_v22 = vpop.permute.xlu0 %640 }
 0x33d   : > { %v672_v60 = vmul.f32 %v629_v58, %v1191_v5  ;;  %v673_v55 = vmul.f32 %v629_v58, %v1194_v6  ;;  %v678_v18 = vmul.f32 %v641_v22, %v1255_v34  ;;  %v679_v14 = vmul.f32 %v641_v22, %v1247_v30  ;;  %v1529_v6 = vld [vmem:[#allocation8_spill] sm:$0xff] }
 0x33f   : > { %704 = vst [vmem:[%s1377_s6 + $0x90] sm:$0xff] %v672_v60  ;;  %705 = vst.msk [vmem:[%s1377_s6 + $0x98] sm:$0xff] %vm224_vm0, %v673_v55 }
 0x340   : > { %710 = vst [vmem:[%s1377_s6 + $0xc0] sm:$0xff] %v678_v18  ;;  %711 = vst.msk [vmem:[%s1377_s6 + $0xc8] sm:$0xff] %vm224_vm0, %v679_v14  ;;  %v637_v16 = vpop.permute.xlu1 %636  ;;  %v649_v5 = vpop.permute.xlu0 %648 }
 0x341   : > { %v676_v42 = vmul.f32 %v637_v16, %v1237_v26  ;;  %v677_v50 = vmul.f32 %v637_v16, %v1529_v6  ;;  %v682_v34 = vmul.f32 %v649_v5, %v1530_v27  ;;  %v683_v30 = vmul.f32 %v649_v5, %v1531_v29 }
 0x343   : > { %708 = vst [vmem:[%s1377_s6 + $0xb0] sm:$0xff] %v676_v42  ;;  %709 = vst.msk [vmem:[%s1377_s6 + $0xb8] sm:$0xff] %vm224_vm0, %v677_v50 }
 0x344   : > { %714 = vst [vmem:[%s1377_s6 + $0xe0] sm:$0xff] %v682_v34  ;;  %715 = vst.msk [vmem:[%s1377_s6 + $0xe8] sm:$0xff] %vm224_vm0, %v683_v30  ;;  %v645_v40 = vpop.permute.xlu1 %644 }
 0x345   : > { %v680_v56 = vmul.f32 %v645_v40, %v1532_v53  ;;  %v681_v26 = vmul.f32 %v645_v40, %v1533_v35 }
 0x347   : > { %712 = vst [vmem:[%s1377_s6 + $0xd0] sm:$0xff] %v680_v56  ;;  %713 = vst.msk [vmem:[%s1377_s6 + $0xd8] sm:$0xff] %vm224_vm0, %v681_v26 }
 0x348   : > { %v653_v57 = vpop.permute.xlu1 %652 }
 0x349   : > { %v684_v37 = vmul.f32 %v653_v57, %v1534_v59  ;;  %v685_v32 = vmul.f32 %v653_v57, %v1535_v41 }
 0x34b   : > { %716 = vst [vmem:[%s1377_s6 + $0xf0] sm:$0xff] %v684_v37  ;;  %717 = vst.msk [vmem:[%s1377_s6 + $0xf8] sm:$0xff] %vm224_vm0, %v685_v32 }
 0x34c   : > { %977 = shalt.err (!%p974_p1)
}
 0x34d   : > { %s978_s28 = scalar_lea.hbm %s1455_s19, 4096  ;;  %s982_s10 = scalar_lea.hbm %s1508_s3, 16384 }
 0x34e   : > { %p979_p3 = scmp.ne.s32.totalorder %s1455_s19, %s978_s28  ;;  %p983_p0 = scmp.lt.u32.totalorder %s1455_s19, %s1508_s3 }
 0x34f   : > { %p984_p2 = scmp.lt.u32.totalorder %s982_s10, %s978_s28  ;;  %p986_p6 = scmp.lt.u32.totalorder %s978_s28, %s1455_s19 }
 0x350   : > { %p980_p4 = pnand %p979_p3, %p1536_p10 }
 0x351   : > { %p985_p7 = por %p984_p2, %p983_p0 }
 0x352   : > { %p981_p5 = pneg %p980_p4 }
 0x353   : > { %p987_p11 = por %p986_p6, %p985_p7 }
 0x355   : > { %p988_p12 = pnand %p987_p11, %p981_p5 }
 0x357   : > { %991 = shalt.err (!%p988_p12)
}
 0x358   : > { %s1039_s4 = smov 256   ;;  %s1040_s6 = smov 16  }
 0x359   : > { %879 = dma.vmem_to_hbm [thread:$0]  (%p1536_p10), %s1457_s7, 4096, %s1455_s19, %s719_s16, %s1039_s4, %s1039_s4, %s1040_s6  }
 0x35a PF: > { %p890_p8 = scmp.ge.s32.totalorder %s1030_s15, 2  ;;  %s748_s9 = sand.u32 1, %s1018_s12  }
 0x35b   : > { %p1537_p9 = scmp.ne.s32.totalorder %s1520_s25, 0  ;;  %s749_s8 = scalar_lea.sflag [#allocation4], %s748_s9 }
 0x35d   : > { %p886_p13 = pnand %p890_p8, %p1537_p9 }
 0x35f   : > { %1013 = dma.done.wait (!%p886_p13), %s749_s8, 4096  }
 0x360   : > { %1015 = vsyncadd (!%p886_p13), %s749_s8, 4294963200  ;;  %p16_p1 = scmp.ge.s32.totalorder %s1086_s18, 6   ;;  %s1538_s12 = smov %s1022_s13 }
 0x361   : > { %s1539_s13 = smov %s1026_s14  ;;  %s1540_s14 = smov %s1098_s21 }
 0x362   : > { %s1541_s15 = smov %s1086_s18  ;;  %18 = sbr.rel (!%p16_p1) target bundleno = 5 (0x5), region = 77 }
 0x369   :  { %754 = vsyncpa [#allocation3], 1 }
 0x36a   :  { %756 = vsyncpa [#allocation3 + $0x1], 1 }
 0x36b   :  { %757 = vsyncpa [#allocation4], 1 }
 0x36c   :  { %759 = vsyncpa [#allocation4 + $0x1], 1 }

</bundles_post_ra>
